<compile_context>
chip_gen: v7x
topology: tpu7x:2x2x1
jax: 0.10.0
libtpu: 0.0.40
codegen_flags: <defaults>
</compile_context>

<pallas_src>
import functools
import math

import jax
import jax.numpy as jnp
import numpy as np
from jax import lax
from jax.experimental import pallas as pl
from jax.experimental.pallas import tpu as pltpu

# ----------------------------- module config ------------------------------- #
FS = 16000
FRAME_LENGTH_MS = 25
FRAME_SHIFT_MS = 10
WLEN = int(math.floor(FRAME_LENGTH_MS * FS / 1000))   # 400 samples / frame
SHIFT = int(math.floor(FRAME_SHIFT_MS * FS / 1000))   # 160 samples / hop
DITHER = 1.0
PREEMPH = 0.97
REMOVE_DC_OFFSET = True
PAD_LENGTH = WLEN          # pad_length=None -> N (no extra zero pad)

LANES = 128
RC = 32                                  # rows per inner chunk in the dense kernel
GROUP_FRAMES = 8                         # frames per dense output store
GROUP_SAMPLES = GROUP_FRAMES * SHIFT     # 1280 (= 10 * 128)
GSPAN = ((GROUP_FRAMES - 1) * SHIFT + WLEN + LANES - 1) // LANES * LANES   # 1536
assert GSPAN - GROUP_SAMPLES <= GROUP_SAMPLES   # halo fits in the next group row


def _round_up(a, b):
    return (a + b - 1) // b * b


def povey_window(n):
    """Kaldi 'povey' window: (0.5 - 0.5*cos(2*pi*k/n))**0.85."""
    a = 2.0 * math.pi / n
    k = jnp.arange(n, dtype=jnp.float32)
    return jnp.power(0.5 - 0.5 * jnp.cos(a * k), 0.85)


# --------------------- in-kernel counter-based RNG -------------------------- #
_MUR1 = -2048144789          # int32 view of 0x85EBCA6B
_MUR2 = -1028477387          # int32 view of 0xC2B2AE35


def _mix32(v):
    """murmur3-style 32-bit finalizer on int32 (logical shifts emulated by masks)."""
    v = v ^ ((v >> 16) & 0xFFFF)
    v = v * _MUR1                       # int32 multiply wraps (two's complement)
    v = v ^ ((v >> 13) & 0x7FFFF)
    v = v * _MUR2
    v = v ^ ((v >> 16) & 0xFFFF)
    return v


def _std_normal_from_index(idx, key):
    """~N(0,1) as a pure function of (sample index, stream key).

    Two hash words -> four 16-bit uniforms -> Irwin-Hall(4), rescaled to unit
    variance (tails truncated at ~±3.46 sigma, fine for dither).  Uses only
    int32/float32 VPU ops, so it lowers on Mosaic and in interpret mode.
    """
    h1 = _mix32(idx ^ key)
    h2 = _mix32(h1 ^ 668265295)         # 0x27D4EB2F
    s = ((h1 & 0xFFFF) + ((h1 >> 16) & 0xFFFF)
         + (h2 & 0xFFFF) + ((h2 >> 16) & 0xFFFF)).astype(jnp.float32)
    return (s - 131070.0) * (math.sqrt(3.0) / 65536.0)


# --------------------- kernel A: dense per-sample stage --------------------- #
def _preprocess_kernel(seed_ref, x_ref, o_ref, *, S, NC, dither):
    """dither + DC-offset removal + pre-emphasis on a dense (R, 128) row view.

    seed_ref : (1,) int32 SMEM (scalar prefetch)
    x_ref    : (R, 128) f32  one zero-padded waveform row, lane-major dense
    o_ref    : (R, 128) f32  preprocessed output (same layout)
    """
    lane = lax.broadcasted_iota(jnp.int32, (RC, 128), 1)       # hoisted out of loops
    sub = lax.broadcasted_iota(jnp.int32, (RC, 128), 0)
    idx_local = sub * 128 + lane
    lane_is0 = lane == 0

    # per-row stream key: seed and batch row mixed through large odd constants
    key = seed_ref[0] * (-1640531527) + (pl.program_id(0) + 1) * 1013904223

    # ---- pass 1: add dither noise (masked to the S valid samples) + row sum ----
    def pass1(ci, tot):
        r0 = ci * RC                                            # multiple of 8
        xc = x_ref[pl.ds(r0, RC), :]                            # (RC, 128)
        if dither != 0.0:
            idx = idx_local + r0 * 128
            noise = _std_normal_from_index(idx, key)
            noise = jnp.where(idx < S, noise, 0.0)              # keep padded tail at 0
            xc = xc + dither * noise
        o_ref[pl.ds(r0, RC), :] = xc
        return tot + jnp.sum(xc, axis=0, keepdims=True)

    tot = lax.fori_loop(0, NC, pass1, jnp.zeros((1, 128), jnp.float32))

    if REMOVE_DC_OFFSET:
        mu = jnp.sum(tot, keepdims=True) * (1.0 / S)            # (1, 1) mean over valid
        mu_term = (1.0 - PREEMPH) * mu                          # folded into pre-emphasis
    else:
        mu_term = jnp.zeros((1, 1), jnp.float32)

    # ---- pass 2: y[i] = x~[i] - c*x~[i-1] - (1-c)*mu  (x~ = dithered input) ----
    # Chunks run in REVERSE order so the cross-chunk "previous sample" read still
    # sees the pass-1 value.  Global sample 0 uses replicate padding (prev = x~[0]).
    def pass2(k, carry):
        ci = (NC - 1) - k
        r0 = ci * RC
        xc = o_ref[pl.ds(r0, RC), :]
        if PREEMPH != 0.0:
            within = jnp.concatenate([xc[:, :1], xc[:, :-1]], axis=1)   # lane shift by 1
            lastcol = xc[:, 127:128]                                    # (RC, 1)
            prev_last = o_ref[pl.ds(jnp.maximum(r0 - 1, 0), 1), 127:128]
            boundary = jnp.where(ci == 0, xc[0:1, 0:1], prev_last)      # replicate at i==0
            colprev = jnp.concatenate([boundary, lastcol[:-1, :]], axis=0)
            prev = jnp.where(lane_is0, colprev, within)
            yc = xc - PREEMPH * prev - mu_term
        else:
            yc = xc - mu_term
        o_ref[pl.ds(r0, RC), :] = yc
        return carry

    lax.fori_loop(0, NC, pass2, 0)


# --------------------- kernel B: framing + window ---------------------------- #
def _frame_window_kernel(yg_ref, win_ref, o_ref, *, gpb):
    """yg_ref: (gpb, GSPAN) halo'd group rows; win_ref: (8, WLEN); o_ref: (gpb*8, WLEN)."""
    win = win_ref[...]                                          # hoisted (8, WLEN)

    def body(g, carry):
        row = yg_ref[pl.ds(g, 1), :]                            # (1, GSPAN)
        frames = [row[:, j * SHIFT: j * SHIFT + WLEN] for j in range(GROUP_FRAMES)]
        o_ref[pl.ds(g * GROUP_FRAMES, GROUP_FRAMES), :] = (
            jnp.concatenate(frames, axis=0) * win)              # one dense (8, WLEN) store
        return carry

    lax.fori_loop(0, gpb, body, 0)


# -------------------------------- wrapper ----------------------------------- #
def wav2win(x, window, seed, *, dither=DITHER):
    """x: (B, S) f32; window: (WLEN,) f32; seed: int -> (B, T, WLEN) f32."""
    B, S = x.shape
    assert S >= WLEN, "snip_edges=True requires num_samples >= window_length"
    T = 1 + (S - WLEN) // SHIFT

    n_groups = (T + GROUP_FRAMES - 1) // GROUP_FRAMES
    gpb = min(8, n_groups)                         # groups per kernel-B block
    ngp = _round_up(n_groups, gpb)                 # padded #groups (whole blocks)
    s_need = (ngp + 1) * GROUP_SAMPLES             # enough for the halo reshape trick
    s_pad = _round_up(max(S, s_need), RC * LANES)
    R = s_pad // LANES
    nc = R // RC

    x = x.astype(jnp.float32)
    if s_pad != S:
        x = jnp.pad(x, ((0, 0), (0, s_pad - S)))
    x_dense = x.reshape(B, R, LANES)
    seed_arr = jnp.asarray(seed, dtype=jnp.int32).reshape((1,))

    # ---- kernel A: dense per-sample preprocessing ----
    pre_kernel = functools.partial(_preprocess_kernel, S=S, NC=nc, dither=float(dither))
    y_dense = pl.pallas_call(
        pre_kernel,
        out_shape=jax.ShapeDtypeStruct((B, R, LANES), jnp.float32),
        grid_spec=pltpu.PrefetchScalarGridSpec(
            num_scalar_prefetch=1,
            grid=(B,),
            in_specs=[pl.BlockSpec((None, R, LANES), lambda b, sref: (b, 0, 0))],
            out_specs=pl.BlockSpec((None, R, LANES), lambda b, sref: (b, 0, 0)),
        ),
        compiler_params=pltpu.CompilerParams(dimension_semantics=("parallel",)),
    )(seed_arr, x_dense)

    # ---- wrapper-side layout plumbing: halo'd group rows (pure reshapes/concat) ----
    y = y_dense.reshape(B, s_pad)                                  # contiguous, free
    main = y[:, : ngp * GROUP_SAMPLES].reshape(B, ngp, GROUP_SAMPLES)
    halo = (y[:, GROUP_SAMPLES: (ngp + 1) * GROUP_SAMPLES]
            .reshape(B, ngp, GROUP_SAMPLES)[:, :, : GSPAN - GROUP_SAMPLES])
    y_groups = jnp.concatenate([main, halo], axis=2)               # (B, ngp, GSPAN)

    win8 = jnp.tile(window.astype(jnp.float32)[None, :], (GROUP_FRAMES, 1))  # (8, WLEN)

    # ---- kernel B: framing + window, chunked over frame groups ----
    t_pad = ngp * GROUP_FRAMES
    n_chunks = ngp // gpb
    frame_kernel = functools.partial(_frame_window_kernel, gpb=gpb)
    out_full = pl.pallas_call(
        frame_kernel,
        out_shape=jax.ShapeDtypeStruct((B, t_pad, WLEN), jnp.float32),
        grid_spec=pltpu.PrefetchScalarGridSpec(
            num_scalar_prefetch=0,
            grid=(B, n_chunks),
            in_specs=[
                pl.BlockSpec((None, gpb, GSPAN), lambda b, c: (b, c, 0)),
                pl.BlockSpec((GROUP_FRAMES, WLEN), lambda b, c: (0, 0)),
            ],
            out_specs=pl.BlockSpec((None, gpb * GROUP_FRAMES, WLEN),
                                   lambda b, c: (b, c, 0)),
        ),
        compiler_params=pltpu.CompilerParams(
            dimension_semantics=("parallel", "parallel")),
    )(y_groups, win8)

    return out_full[:, :T, :]


# ---------------------------- pure-JAX reference ---------------------------- #
def wav2win_ref(x, window):
    """Reference for the dither=0 path (dither noise is kernel-internal RNG)."""
    if REMOVE_DC_OFFSET:
        x = x - jnp.mean(x, axis=1, keepdims=True)
    if PREEMPH != 0.0:
        x_off = jnp.concatenate([x[:, :1], x[:, :-1]], axis=1)
        x = x - PREEMPH * x_off
    B, S = x.shape
    T = 1 + (S - WLEN) // SHIFT
    frames = jnp.stack([x[:, t * SHIFT: t * SHIFT + WLEN] for t in range(T)], axis=1)
    return frames * window[None, None, :]


# ---------------------------------- main ------------------------------------ #
if __name__ == "__main__":
    B, S = 2, 1200                       # T = 1 + (1200 - 400)//160 = 6 frames
    T = 1 + (S - WLEN) // SHIFT

    key = jax.random.PRNGKey(0)
    x = jax.random.normal(key, (B, S), dtype=jnp.float32)
    window = povey_window(WLEN)

    # default module config (dither=1): run and sanity-check
    out = jax.block_until_ready(wav2win(x, window, 12345, dither=DITHER))
    assert out.shape == (B, T, WLEN)
    assert bool(jnp.all(jnp.isfinite(out)))

    # dither disabled: exact numerical check against the pure-JAX reference
    out0 = jax.block_until_ready(wav2win(x, window, 12345, dither=0.0))
    ref0 = jax.block_until_ready(wav2win_ref(x, window))
    np.testing.assert_allclose(np.asarray(out0), np.asarray(ref0),
                               rtol=1e-4, atol=2e-4)

    # statistical check of the in-kernel dither noise: the injected perturbation,
    # after pre-emphasis and windowing, should have std ~ dither*sqrt(1+c^2)*rms(win)
    diff = np.asarray(out - out0)
    exp_std = DITHER * math.sqrt(1.0 + PREEMPH ** 2) * float(jnp.sqrt(jnp.mean(window ** 2)))
    ratio = float(np.std(diff)) / exp_std
    assert 0.7 < ratio < 1.3, f"dither noise std ratio off: {ratio}"

    print("KERNEL_OK")
</pallas_src>

<mosaic_0001>
module attributes {stable_mosaic.version = 11 : i64} {
  func.func @_preprocess_kernel(%arg0: i32, %arg1: memref<1xi32, #tpu.memory_space<smem>>, %arg2: memref<1x32x128xf32, #tpu.memory_space<vmem>>, %arg3: memref<1x32x128xf32, #tpu.memory_space<vmem>>) attributes {dimension_semantics = [#tpu.dimension_semantics<parallel>], iteration_bounds = array<i64: 2>, scalar_prefetch = 1 : i64, scratch_operands = 0 : i64, tpu.core_type = #tpu.core_type<tc>, window_params = [{transform_indices = @transform_0, window_bounds = array<i64: 1, 32, 128>}, {transform_indices = @transform_1, window_bounds = array<i64: 1, 32, 128>}]} {
    %0 = tpu.iota {dimensions = array<i32: 1>} : vector<32x128xi32>
    %1 = tpu.iota {dimensions = array<i32: 0>} : vector<32x128xi32>
    %c128_i32 = arith.constant 128 : i32
    %2 = vector.broadcast %c128_i32 : i32 to vector<32x128xi32>
    %3 = arith.muli %1, %2 : vector<32x128xi32>
    %4 = arith.addi %3, %0 : vector<32x128xi32>
    %c0_i32 = arith.constant 0 : i32
    %5 = vector.broadcast %c0_i32 : i32 to vector<32x128xi32>
    %6 = arith.cmpi eq, %0, %5 : vector<32x128xi32>
    %c0 = arith.constant 0 : index
    %7 = memref.load %arg1[%c0] : memref<1xi32, #tpu.memory_space<smem>>
    %c-1640531527_i32 = arith.constant -1640531527 : i32
    %8 = arith.muli %7, %c-1640531527_i32 : i32
    %c1_i32 = arith.constant 1 : i32
    %9 = arith.addi %arg0, %c1_i32 : i32
    %c1013904223_i32 = arith.constant 1013904223 : i32
    %10 = arith.muli %9, %c1013904223_i32 : i32
    %11 = arith.addi %8, %10 : i32
    %cst = arith.constant 0.000000e+00 : f32
    %12 = vector.broadcast %cst : f32 to vector<1x128xf32>
    %c0_i32_0 = arith.constant 0 : i32
    %c32_i32 = arith.constant 32 : i32
    %13 = arith.muli %c0_i32_0, %c32_i32 : i32
    %c0_1 = arith.constant 0 : index
    %14 = arith.index_cast %13 : i32 to index
    %c0_2 = arith.constant 0 : index
    %15 = vector.load %arg2[%c0_1, %14, %c0_2] : memref<1x32x128xf32, #tpu.memory_space<vmem>>, vector<1x32x128xf32>
    %16 = vector.shape_cast %15 : vector<1x32x128xf32> to vector<32x128xf32>
    %c128_i32_3 = arith.constant 128 : i32
    %17 = arith.muli %13, %c128_i32_3 : i32
    %18 = vector.broadcast %17 : i32 to vector<32x128xi32>
    %19 = arith.addi %4, %18 : vector<32x128xi32>
    %20 = vector.broadcast %11 : i32 to vector<32x128xi32>
    %21 = arith.xori %19, %20 : vector<32x128xi32>
    %c16_i32 = arith.constant 16 : i32
    %22 = vector.broadcast %c16_i32 : i32 to vector<32x128xi32>
    %23 = arith.shrsi %21, %22 : vector<32x128xi32>
    %c65535_i32 = arith.constant 65535 : i32
    %24 = vector.broadcast %c65535_i32 : i32 to vector<32x128xi32>
    %25 = arith.andi %23, %24 : vector<32x128xi32>
    %26 = arith.xori %21, %25 : vector<32x128xi32>
    %c-2048144789_i32 = arith.constant -2048144789 : i32
    %27 = vector.broadcast %c-2048144789_i32 : i32 to vector<32x128xi32>
    %28 = arith.muli %26, %27 : vector<32x128xi32>
    %c13_i32 = arith.constant 13 : i32
    %29 = vector.broadcast %c13_i32 : i32 to vector<32x128xi32>
    %30 = arith.shrsi %28, %29 : vector<32x128xi32>
    %c524287_i32 = arith.constant 524287 : i32
    %31 = vector.broadcast %c524287_i32 : i32 to vector<32x128xi32>
    %32 = arith.andi %30, %31 : vector<32x128xi32>
    %33 = arith.xori %28, %32 : vector<32x128xi32>
    %c-1028477387_i32 = arith.constant -1028477387 : i32
    %34 = vector.broadcast %c-1028477387_i32 : i32 to vector<32x128xi32>
    %35 = arith.muli %33, %34 : vector<32x128xi32>
    %c16_i32_4 = arith.constant 16 : i32
    %36 = vector.broadcast %c16_i32_4 : i32 to vector<32x128xi32>
    %37 = arith.shrsi %35, %36 : vector<32x128xi32>
    %c65535_i32_5 = arith.constant 65535 : i32
    %38 = vector.broadcast %c65535_i32_5 : i32 to vector<32x128xi32>
    %39 = arith.andi %37, %38 : vector<32x128xi32>
    %40 = arith.xori %35, %39 : vector<32x128xi32>
    %c668265295_i32 = arith.constant 668265295 : i32
    %41 = vector.broadcast %c668265295_i32 : i32 to vector<32x128xi32>
    %42 = arith.xori %40, %41 : vector<32x128xi32>
    %c16_i32_6 = arith.constant 16 : i32
    %43 = vector.broadcast %c16_i32_6 : i32 to vector<32x128xi32>
    %44 = arith.shrsi %42, %43 : vector<32x128xi32>
    %c65535_i32_7 = arith.constant 65535 : i32
    %45 = vector.broadcast %c65535_i32_7 : i32 to vector<32x128xi32>
    %46 = arith.andi %44, %45 : vector<32x128xi32>
    %47 = arith.xori %42, %46 : vector<32x128xi32>
    %c-2048144789_i32_8 = arith.constant -2048144789 : i32
    %48 = vector.broadcast %c-2048144789_i32_8 : i32 to vector<32x128xi32>
    %49 = arith.muli %47, %48 : vector<32x128xi32>
    %c13_i32_9 = arith.constant 13 : i32
    %50 = vector.broadcast %c13_i32_9 : i32 to vector<32x128xi32>
    %51 = arith.shrsi %49, %50 : vector<32x128xi32>
    %c524287_i32_10 = arith.constant 524287 : i32
    %52 = vector.broadcast %c524287_i32_10 : i32 to vector<32x128xi32>
    %53 = arith.andi %51, %52 : vector<32x128xi32>
    %54 = arith.xori %49, %53 : vector<32x128xi32>
    %c-1028477387_i32_11 = arith.constant -1028477387 : i32
    %55 = vector.broadcast %c-1028477387_i32_11 : i32 to vector<32x128xi32>
    %56 = arith.muli %54, %55 : vector<32x128xi32>
    %c16_i32_12 = arith.constant 16 : i32
    %57 = vector.broadcast %c16_i32_12 : i32 to vector<32x128xi32>
    %58 = arith.shrsi %56, %57 : vector<32x128xi32>
    %c65535_i32_13 = arith.constant 65535 : i32
    %59 = vector.broadcast %c65535_i32_13 : i32 to vector<32x128xi32>
    %60 = arith.andi %58, %59 : vector<32x128xi32>
    %61 = arith.xori %56, %60 : vector<32x128xi32>
    %c65535_i32_14 = arith.constant 65535 : i32
    %62 = vector.broadcast %c65535_i32_14 : i32 to vector<32x128xi32>
    %63 = arith.andi %40, %62 : vector<32x128xi32>
    %c16_i32_15 = arith.constant 16 : i32
    %64 = vector.broadcast %c16_i32_15 : i32 to vector<32x128xi32>
    %65 = arith.shrsi %40, %64 : vector<32x128xi32>
    %c65535_i32_16 = arith.constant 65535 : i32
    %66 = vector.broadcast %c65535_i32_16 : i32 to vector<32x128xi32>
    %67 = arith.andi %65, %66 : vector<32x128xi32>
    %68 = arith.addi %63, %67 : vector<32x128xi32>
    %c65535_i32_17 = arith.constant 65535 : i32
    %69 = vector.broadcast %c65535_i32_17 : i32 to vector<32x128xi32>
    %70 = arith.andi %61, %69 : vector<32x128xi32>
    %71 = arith.addi %68, %70 : vector<32x128xi32>
    %c16_i32_18 = arith.constant 16 : i32
    %72 = vector.broadcast %c16_i32_18 : i32 to vector<32x128xi32>
    %73 = arith.shrsi %61, %72 : vector<32x128xi32>
    %c65535_i32_19 = arith.constant 65535 : i32
    %74 = vector.broadcast %c65535_i32_19 : i32 to vector<32x128xi32>
    %75 = arith.andi %73, %74 : vector<32x128xi32>
    %76 = arith.addi %71, %75 : vector<32x128xi32>
    %77 = arith.sitofp %76 : vector<32x128xi32> to vector<32x128xf32>
    %cst_20 = arith.constant 1.310700e+05 : f32
    %78 = vector.broadcast %cst_20 : f32 to vector<32x128xf32>
    %79 = arith.subf %77, %78 : vector<32x128xf32>
    %cst_21 = arith.constant 2.64289974E-5 : f32
    %80 = vector.broadcast %cst_21 : f32 to vector<32x128xf32>
    %81 = arith.mulf %79, %80 : vector<32x128xf32>
    %c1200_i32 = arith.constant 1200 : i32
    %82 = vector.broadcast %c1200_i32 : i32 to vector<32x128xi32>
    %83 = arith.cmpi slt, %19, %82 : vector<32x128xi32>
    %cst_22 = arith.constant 0.000000e+00 : f32
    %84 = vector.broadcast %cst_22 : f32 to vector<32x128xf32>
    %85 = arith.select %83, %81, %84 : vector<32x128xi1>, vector<32x128xf32>
    %cst_23 = arith.constant 1.000000e+00 : f32
    %86 = vector.broadcast %cst_23 : f32 to vector<32x128xf32>
    %87 = arith.mulf %86, %85 : vector<32x128xf32>
    %88 = arith.addf %16, %87 : vector<32x128xf32>
    %c0_24 = arith.constant 0 : index
    %89 = arith.index_cast %13 : i32 to index
    %c0_25 = arith.constant 0 : index
    %90 = vector.load %arg3[%c0_24, %89, %c0_25] : memref<1x32x128xf32, #tpu.memory_space<vmem>>, vector<1x32x128xf32>
    %91 = vector.shape_cast %90 : vector<1x32x128xf32> to vector<32x128xf32>
    %92 = vector.shape_cast %88 : vector<32x128xf32> to vector<1x32x128xf32>
    tpu.vector_store %arg3[%c0_24, %89, %c0_25], %92 {strides = array<i32>} : memref<1x32x128xf32, #tpu.memory_space<vmem>>, vector<1x32x128xf32>,
    %cst_26 = arith.constant dense<0.000000e+00> : vector<128xf32>
    %93 = vector.multi_reduction <add>, %88, %cst_26 [0] : vector<32x128xf32> to vector<128xf32>
    %94 = vector.shape_cast %93 : vector<128xf32> to vector<1x128xf32>
    %95 = arith.addf %12, %94 : vector<1x128xf32>
    %c1_i32_27 = arith.constant 1 : i32
    %96 = vector.shape_cast %95 : vector<1x128xf32> to vector<1x1x128xf32>
    %cst_28 = arith.constant dense<0.000000e+00> : vector<1xf32>
    %97 = vector.multi_reduction <add>, %96, %cst_28 [1, 2] : vector<1x1x128xf32> to vector<1xf32>
    %98 = vector.shape_cast %97 : vector<1xf32> to vector<1x1x1xf32>
    %99 = vector.extract %98[0, 0, 0] : f32 from vector<1x1x1xf32>
    %100 = vector.broadcast %99 : f32 to vector<1x1xf32>
    %cst_29 = arith.constant 8.33333353E-4 : f32
    %101 = vector.broadcast %cst_29 : f32 to vector<1x1xf32>
    %102 = arith.mulf %100, %101 : vector<1x1xf32>
    %cst_30 = arith.constant 3.000000e-02 : f32
    %103 = vector.broadcast %cst_30 : f32 to vector<1x1xf32>
    %104 = arith.mulf %103, %102 : vector<1x1xf32>
    %c0_i32_31 = arith.constant 0 : i32
    %c0_i32_32 = arith.constant 0 : i32
    %105 = arith.subi %c0_i32_32, %c0_i32_31 : i32
    %c32_i32_33 = arith.constant 32 : i32
    %106 = arith.muli %105, %c32_i32_33 : i32
    %c0_34 = arith.constant 0 : index
    %107 = arith.index_cast %106 : i32 to index
    %c0_35 = arith.constant 0 : index
    %108 = vector.load %arg3[%c0_34, %107, %c0_35] : memref<1x32x128xf32, #tpu.memory_space<vmem>>, vector<1x32x128xf32>
    %109 = vector.shape_cast %108 : vector<1x32x128xf32> to vector<32x128xf32>
    %110 = vector.extract_strided_slice %109 {offsets = [0, 0], sizes = [32, 1], strides = [1, 1]} : vector<32x128xf32> to vector<32x1xf32>
    %111 = vector.extract_strided_slice %109 {offsets = [0, 0], sizes = [32, 127], strides = [1, 1]} : vector<32x128xf32> to vector<32x127xf32>
    %112 = tpu.concatenate %110, %111 in 1 : vector<32x1xf32>, vector<32x127xf32> -> vector<32x128xf32>
    %113 = vector.extract_strided_slice %109 {offsets = [0, 127], sizes = [32, 1], strides = [1, 1]} : vector<32x128xf32> to vector<32x1xf32>
    %c1_i32_36 = arith.constant 1 : i32
    %114 = arith.subi %106, %c1_i32_36 : i32
    %c0_i32_37 = arith.constant 0 : i32
    %115 = arith.maxsi %114, %c0_i32_37 : i32
    %c0_38 = arith.constant 0 : index
    %116 = arith.index_cast %115 : i32 to index
    %c127 = arith.constant 127 : index
    %117 = vector.load %arg3[%c0_38, %116, %c127] : memref<1x32x128xf32, #tpu.memory_space<vmem>>, vector<1x1x1xf32>
    %118 = vector.shape_cast %117 : vector<1x1x1xf32> to vector<1x1xf32>
    %c0_i32_39 = arith.constant 0 : i32
    %119 = arith.cmpi eq, %105, %c0_i32_39 : i32
    %120 = vector.extract_strided_slice %109 {offsets = [0, 0], sizes = [1, 1], strides = [1, 1]} : vector<32x128xf32> to vector<1x1xf32>
    %121 = arith.select %119, %120, %118 : vector<1x1xf32>
    %122 = vector.extract_strided_slice %113 {offsets = [0, 0], sizes = [31, 1], strides = [1, 1]} : vector<32x1xf32> to vector<31x1xf32>
    %123 = tpu.concatenate %121, %122 in 0 : vector<1x1xf32>, vector<31x1xf32> -> vector<32x1xf32>
    %124 = vector.shape_cast %123 : vector<32x1xf32> to vector<32x1xf32>
    %125 = vector.broadcast %124 : vector<32x1xf32> to vector<32x128xf32>
    %126 = arith.select %6, %125, %112 : vector<32x128xi1>, vector<32x128xf32>
    %cst_40 = arith.constant 9.700000e-01 : f32
    %127 = vector.broadcast %cst_40 : f32 to vector<32x128xf32>
    %128 = arith.mulf %127, %126 : vector<32x128xf32>
    %129 = arith.subf %109, %128 : vector<32x128xf32>
    %130 = vector.broadcast %104 : vector<1x1xf32> to vector<32x128xf32>
    %131 = arith.subf %129, %130 : vector<32x128xf32>
    %c0_41 = arith.constant 0 : index
    %132 = arith.index_cast %106 : i32 to index
    %c0_42 = arith.constant 0 : index
    %133 = vector.load %arg3[%c0_41, %132, %c0_42] : memref<1x32x128xf32, #tpu.memory_space<vmem>>, vector<1x32x128xf32>
    %134 = vector.shape_cast %133 : vector<1x32x128xf32> to vector<32x128xf32>
    %135 = vector.shape_cast %131 : vector<32x128xf32> to vector<1x32x128xf32>
    tpu.vector_store %arg3[%c0_41, %132, %c0_42], %135 {strides = array<i32>} : memref<1x32x128xf32, #tpu.memory_space<vmem>>, vector<1x32x128xf32>,
    %c1_i32_43 = arith.constant 1 : i32
    return
  }
  func.func @transform_0(%arg0: i32, %arg1: memref<1xi32, #tpu.memory_space<smem>>) -> (i32, i32, i32) {
    %c0_i32 = arith.constant 0 : i32
    %c0_i32_0 = arith.constant 0 : i32
    %c0_i32_1 = arith.constant 0 : i32
    return %arg0, %c0_i32, %c0_i32_0 : i32, i32, i32
  }
  func.func @transform_1(%arg0: i32, %arg1: memref<1xi32, #tpu.memory_space<smem>>) -> (i32, i32, i32) {
    %c0_i32 = arith.constant 0 : i32
    %c0_i32_0 = arith.constant 0 : i32
    %c0_i32_1 = arith.constant 0 : i32
    return %arg0, %c0_i32, %c0_i32_0 : i32, i32, i32
  }
}

</mosaic_0001>

<bundles_post_ra>
// kernel: tpu_custom_call.1
= control target key start
LH: loop header
LB: loop body
LE: loop exit
PB: predicated region body
PF: predicated region fallthrough
CT: control target
= control target key end

     0   :  { %s995_s0 = inlined_call_operand.<no memory space> [shape: s32[1], index: 0, kind: input, shape index: {}]   ;;  %s996_s1 = inlined_call_operand.hbm [shape: f32[2,32,128], index: 1, kind: input, shape index: {}]   ;;  %s997_s2 = inlined_call_operand.hbm [shape: f32[2,32,128], index: 2, kind: output, shape index: {}]  }
   0x1   :  { %7 = sst [smem:[#allocation3]] %s995_s0 }
   0x2   :  { %8 = vsyncpa [#allocation5], 0 }
   0x3   :  { %10 = vsyncpa [#allocation5 + $0x1], 0 }
   0x4   :  { %11 = vsyncpa [#allocation6], 0 }
   0x5   :  { %13 = vsyncpa [#allocation6 + $0x1], 0  ;;  %s745_s11 = smov 0   ;;  %s747_s12 = smov 0  }
   0x6   :  { %s749_s13 = smov 0   ;;  %s751_s14 = smov 0  }
   0x7 LB: > { %s766_s0 = sadd.s32 4294967295, %s717_s14   ;;  %s513_s15 = sadd.s32 4294967294, %s717_s14   ;;  %s717_s14 = sphi %s751_s14, %s1010_s14   ;;  %s713_s13 = sphi %s749_s13, %s1009_s13   ;;  %s709_s12 = sphi %s747_s12, %s1008_s12   ;;  %s705_s11 = sphi %s745_s11, %s1007_s11  }
   0x8   : > { %s770_s16 = sadd.s32 1, %s717_s14   ;;  %s26_s17 = sadd.s32 1, %s713_s13 }
   0x9   : > { %s23_s18 = ssub.s32 %s717_s14, %s770_s16  ;;  %p33_p0 = scmp.ne.s32.totalorder %s713_s13, %s709_s12 }
   0xa   : > { %p24_p1 = scmp.eq.s32.totalorder %s23_s18, 0  ;;  %p34_p2 = scmp.eq.s32.totalorder %s717_s14, 0 }
   0xb   : > { %p39_p3 = scmp.ne.s32.totalorder %s709_s12, %s705_s11  ;;  %p40_p4 = scmp.eq.s32.totalorder %s766_s0, 0 }
   0xc   : > { %s782_s19 = scalar_select %p24_p1, %s713_s13, %s26_s17  }
   0xd   : > { %p784_p5 = por %p34_p2, %p33_p0  ;;  %p788_p6 = por %p40_p4, %p39_p3 }
   0xe   : > { %p63_p7 = scmp.eq.s32.totalorder %s766_s0, 1  ;;  %p69_p8 = scmp.eq.s32.totalorder %s513_s15, 1 }
   0xf   : > { %p579_p10 = scmp.lt.s32.totalorder %s717_s14, 2  ;;  %s89_s24 = sand.u32 1, %s713_s13  }
  0x10   : > { %p795_p11 = por %p63_p7, %p33_p0  ;;  %p799_p12 = por %p69_p8, %p39_p3 }
  0x11   : > { %s563_s25 = sshll.u32 %s717_s14, 9  ;;  %s516_s26 = sshll.u32 %s89_s24, 5 }
  0x12   : > { %s1001_s22 = scalar_select %p795_p11, 1, 0 }
  0x13   : > { %s1002_s23 = scalar_select %p799_p12, 1, 0 }
  0x14   : > { %s808_s29 = scalar_lea.hbm %s996_s1, %s563_s25  ;;  %s93_s30 = scalar_lea.vmem [#allocation4], %s516_s26 }
  0x15   : > { %s100_s3 = sshll.u32 %s93_s30, 4  ;;  %p812_p13 = pnand %p579_p10, %p784_p5  ;;  %s816_s3 = int_to_ptr.vmem [resolvable:$true] %s100_s3 }
  0x16   : > { %s818_s5 = scalar_lea.sflag [#allocation5], %s89_s24  ;;  %s621_s6 = scalar_lea.hbm %s808_s29, 512 }
  0x17   : > { %p622_p0 = scmp.ne.s32.totalorder %s808_s29, %s621_s6  ;;  %p623_p1 = pneg %p812_p13 }
  0x18   : > { %s626_s9 = scalar_lea.hbm %s996_s1, 1024  ;;  %p627_p4 = scmp.lt.u32.totalorder %s808_s29, %s996_s1 }
  0x19   : > { %p624_p2 = pnand %p623_p1, %p622_p0  ;;  %p628_p5 = scmp.lt.u32.totalorder %s626_s9, %s621_s6 }
  0x1a   : > { %p630_p8 = scmp.lt.u32.totalorder %s621_s6, %s808_s29 }
  0x1b   : > { %p625_p3 = pneg %p624_p2  ;;  %p629_p7 = por %p628_p5, %p627_p4 }
  0x1d   : > { %p631_p10 = por %p630_p8, %p629_p7 }
  0x1f   : > { %p632_p9 = pnand %p631_p10, %p625_p3 }
  0x21   : > { %635 = shalt.err (!%p632_p9)
}
  0x22   : > { %s636_s17 = scalar_lea.vmem %s816_s3, 512  ;;  %s719_s18 = smov [#allocation4]  }
  0x23   : > { %p637_p0 = scmp.ne.s32.totalorder %s816_s3, %s636_s17  ;;  %s641_s20 = sshll.u32 %s719_s18, 4  ;;  %s642_s20 = int_to_ptr.vmem [resolvable:$false] %s641_s20 }
  0x24   : > { %s643_s24 = scalar_lea.vmem %s642_s20, 1024  ;;  %p644_p11 = scmp.lt.s32.totalorder %s816_s3, %s642_s20 }
  0x25   : > { %p639_p2 = pnand %p637_p0, %p623_p1  ;;  %p645_p4 = scmp.lt.s32.totalorder %s643_s24, %s636_s17 }
  0x27   : > { %p640_p12 = pneg %p639_p2  ;;  %p646_p5 = por %p645_p4, %p644_p11 }
  0x29   : > { %p647_p7 = pnand %p646_p5, %p640_p12 }
  0x2b   : > { %650 = shalt.err (!%p647_p7)
}
  0x2c   : > { %s720_s25 = smov 128   ;;  %s721_s26 = smov 8  }
  0x2d   : > { %574 = dma.hbm_to_vmem [thread:$0]  (!%p812_p13), %s808_s29, 512, %s816_s3, %s818_s5, %s720_s25, %s720_s25, %s721_s26  }
  0x2e   : > { %p519_p9 = scmp.ge.s32.totalorder %s717_s14, 1  ;;  %p108_p1 = scmp.lt.s32.totalorder %s717_s14, 3 }
  0x30   : > { %p109_p3 = pnand %p519_p9, %p108_p1 }
  0x31   : > { %s849_s27 = sand.u32 (!%p109_p3), 1, %s709_s12  }
  0x32   : > { %112 = sbr.rel (%p109_p3) target bundleno = 456 (0x1c8), region = 24  ;;  %s520_s28 = sshll.u32 (!%p109_p3), %s849_s27, 5 }
  0x33   : > { %s115_s30 = scalar_lea.sflag (!%p109_p3), [#allocation5], %s849_s27  ;;  %s855_s6 = scalar_lea.vmem (!%p109_p3), [#allocation4], %s520_s28 }
  0x39   : > { %696 = dma.done.wait (%p788_p6), %s115_s30, 512  }
  0x3a   : > { %698 = vsyncadd (%p788_p6), %s115_s30, 4294966784  ;;  %v137_v0 = vlaneseq  ;;  %s153_s29 = sld [smem:[#allocation3]]  ;;  %s155_s3 = sadd.s32 1, %s766_s0  ;;  %vm333_vm4 = vcmask 1040384   ;;  %vm367_vm5 = vcmask 7168  }
  0x3b   : > { %s156_s4 = smul.u32 1013904223, %s155_s3  ;;  %s722_s7 = smov 1  }
  0x3c   : > { %v140_v1 = vshrl.u32 %v137_v0, 7  ;;  %v862_v2 = vand.u32 127, %v137_v0  ;;  %s136_s9 = scalar_lea.vmem [#allocation7], %s520_s28  ;;  %s564_s10 = sshll.u32 %s766_s0, 9 }
  0x3d   : > { %s440_s15 = sshll.u32 %s136_s9, 4  ;;  %s949_s20 = scalar_lea.hbm %s997_s2, %s564_s10  ;;  %s951_s15 = int_to_ptr.vmem [resolvable:$true] %s440_s15 }
  0x3e   : > { %v141_v3 = vadd.s32 8, %v140_v1  ;;  %v142_v4 = vadd.s32 16, %v140_v1  ;;  %v143_v5 = vadd.s32 24, %v140_v1  ;;  %v144_v6 = vmul.u32 128, %v140_v1  ;;  %s427_s24 = scalar_lea.sflag [#allocation6], %s849_s27  ;;  %s651_s25 = scalar_lea.vmem %s951_s15, 512 }
  0x3f   : > { %vm152_vm6 = vcmp.eq.s32.totalorder %v862_v2, 0  ;;  %p652_p6 = scmp.ne.s32.totalorder %s951_s15, %s651_s25  ;;  %p1004_p11 = scmp.ne.s32.totalorder %s1001_s22, 0 }
  0x40   : > { %v145_v7 = vmul.u32 128, %v141_v3  ;;  %v146_v8 = vmul.u32 128, %v142_v4  ;;  %v865_v10 = vadd.s32 %v144_v6, %v862_v2  ;;  %s154_s21 = smul.u32 2654435769, %s153_s29  ;;  %s724_s0 = smov [#allocation7]  }
  0x41   : > { %v147_v9 = vmul.u32 128, %v143_v5  ;;  %p653_p12 = pnand %p652_p6, %p1004_p11  ;;  %s655_s26 = sshll.u32 %s724_s0, 4  ;;  %s656_s26 = int_to_ptr.vmem [resolvable:$false] %s655_s26 }
  0x42   : > { %v868_v11 = vadd.s32 %v145_v7, %v862_v2  ;;  %v871_v12 = vadd.s32 %v146_v8, %v862_v2  ;;  %s157_s5 = sadd.s32 %s156_s4, %s154_s21  ;;  %vm307_vm0 = vcmp.lt.s32.totalorder %v865_v10, 1200  ;;  %s657_s28 = scalar_lea.vmem %s656_s26, 1024 }
  0x43   : > { %v874_v13 = vadd.s32 %v147_v9, %v862_v2  ;;  %v162_v14 = vstv %s157_s5  ;;  %p654_p13 = pneg %p653_p12  ;;  %p658_p8 = scmp.lt.s32.totalorder %s951_s15, %s656_s26 }
  0x44   : > { %v163_v15 = vxor.u32 %v162_v14, %v865_v10  ;;  %v164_v16 = vxor.u32 %v162_v14, %v868_v11  ;;  %v165_v17 = vxor.u32 %v162_v14, %v871_v12  ;;  %vm308_vm1 = vcmp.lt.s32.totalorder %v868_v11, 1200  ;;  %p659_p10 = scmp.lt.s32.totalorder %s657_s28, %s651_s25 }
  0x45   : > { %v166_v18 = vxor.u32 %v162_v14, %v874_v13  ;;  %vm309_vm2 = vcmp.lt.s32.totalorder %v871_v12, 1200  ;;  %vm310_vm3 = vcmp.lt.s32.totalorder %v874_v13, 1200 }
  0x46   : > { %v522_v19 = vshrl.u32 %v163_v15, 16  ;;  %v523_v20 = vshrl.u32 %v164_v16, 16  ;;  %v524_v21 = vshrl.u32 %v165_v17, 16  ;;  %p660_p0 = por %p659_p10, %p658_p8 }
  0x47   : > { %v525_v22 = vshrl.u32 %v166_v18, 16 }
  0x48   : > { %v175_v23 = vxor.u32 %v522_v19, %v163_v15  ;;  %v176_v24 = vxor.u32 %v523_v20, %v164_v16  ;;  %v177_v25 = vxor.u32 %v524_v21, %v165_v17  ;;  %p661_p2 = pnand %p660_p0, %p654_p13 }
  0x49   : > { %v178_v26 = vxor.u32 %v525_v22, %v166_v18 }
  0x4a   : > { %v179_v27 = vmul.u32 2246822507, %v175_v23  ;;  %v180_v28 = vmul.u32 2246822507, %v176_v24 }
  0x4b   : > { %v181_v29 = vmul.u32 2246822507, %v177_v25  ;;  %v182_v30 = vmul.u32 2246822507, %v178_v26 }
  0x4c   : > { %v526_v31 = vshrl.u32 %v179_v27, 13  ;;  %v527_v32 = vshrl.u32 %v180_v28, 13 }
  0x4d   : > { %v528_v33 = vshrl.u32 %v181_v29, 13  ;;  %v529_v34 = vshrl.u32 %v182_v30, 13 }
  0x4e   : > { %v191_v35 = vxor.u32 %v526_v31, %v179_v27  ;;  %v192_v36 = vxor.u32 %v527_v32, %v180_v28 }
  0x4f   : > { %v193_v37 = vxor.u32 %v528_v33, %v181_v29  ;;  %v194_v38 = vxor.u32 %v529_v34, %v182_v30 }
  0x50   : > { %v195_v39 = vmul.u32 3266489909, %v191_v35  ;;  %v196_v40 = vmul.u32 3266489909, %v192_v36 }
  0x51   : > { %v197_v41 = vmul.u32 3266489909, %v193_v37  ;;  %v198_v42 = vmul.u32 3266489909, %v194_v38 }
  0x52   : > { %v530_v43 = vshrl.u32 %v195_v39, 16  ;;  %v531_v44 = vshrl.u32 %v196_v40, 16 }
  0x53   : > { %v532_v45 = vshrl.u32 %v197_v41, 16  ;;  %v533_v46 = vshrl.u32 %v198_v42, 16 }
  0x54   : > { %v207_v47 = vxor.u32 %v530_v43, %v195_v39  ;;  %v208_v48 = vxor.u32 %v531_v44, %v196_v40 }
  0x55   : > { %v209_v49 = vxor.u32 %v532_v45, %v197_v41  ;;  %v210_v50 = vxor.u32 %v533_v46, %v198_v42 }
  0x56   : > { %v211_v51 = vxor.u32 668265295, %v207_v47  ;;  %v212_v52 = vxor.u32 668265295, %v208_v48  ;;  %v259_v14 = vand.u32 65535, %v207_v47  ;;  %v260_v15 = vand.u32 65535, %v208_v48 }
  0x57   : > { %v213_v53 = vxor.u32 668265295, %v209_v49  ;;  %v214_v54 = vxor.u32 668265295, %v210_v50  ;;  %v261_v18 = vand.u32 65535, %v209_v49  ;;  %v262_v19 = vand.u32 65535, %v210_v50 }
  0x58   : > { %v534_v55 = vshrl.u32 %v211_v51, 16  ;;  %v535_v56 = vshrl.u32 %v212_v52, 16  ;;  %v546_v22 = vshrl.u32 %v207_v47, 16  ;;  %v547_v23 = vshrl.u32 %v208_v48, 16 }
  0x59   : > { %v536_v57 = vshrl.u32 %v213_v53, 16  ;;  %v537_v58 = vshrl.u32 %v214_v54, 16  ;;  %v548_v26 = vshrl.u32 %v209_v49, 16  ;;  %v549_v27 = vshrl.u32 %v210_v50, 16 }
  0x5a   : > { %v223_v59 = vxor.u32 %v534_v55, %v211_v51  ;;  %v224_v60 = vxor.u32 %v535_v56, %v212_v52  ;;  %v271_v34 = vadd.s32 %v546_v22, %v259_v14  ;;  %v272_v35 = vadd.s32 %v547_v23, %v260_v15 }
  0x5b   : > { %v225_v61 = vxor.u32 %v536_v57, %v213_v53  ;;  %v226_v62 = vxor.u32 %v537_v58, %v214_v54  ;;  %v273_v38 = vadd.s32 %v548_v26, %v261_v18  ;;  %v274_v39 = vadd.s32 %v549_v27, %v262_v19 }
  0x5c   : > { %v227_v63 = vmul.u32 2246822507, %v223_v59  ;;  %v228_v0 = vmul.u32 2246822507, %v224_v60  ;;  %v158_v60 = vld [vmem:[%s855_s6] sm:$0xff] }
  0x5d   : > { %v229_v1 = vmul.u32 2246822507, %v225_v61  ;;  %v230_v3 = vmul.u32 2246822507, %v226_v62  ;;  %v159_v61 = vld [vmem:[%s855_s6 + $0x8] sm:$0xff] }
  0x5e   : > { %v538_v4 = vshrl.u32 %v227_v63, 13  ;;  %v539_v5 = vshrl.u32 %v228_v0, 13 }
  0x5f   : > { %v540_v6 = vshrl.u32 %v229_v1, 13  ;;  %v541_v7 = vshrl.u32 %v230_v3, 13 }
  0x60   : > { %v239_v8 = vxor.u32 %v538_v4, %v227_v63  ;;  %v240_v9 = vxor.u32 %v539_v5, %v228_v0  ;;  %v160_v5 = vld [vmem:[%s855_s6 + $0x10] sm:$0xff] }
  0x61   : > { %v241_v16 = vxor.u32 %v540_v6, %v229_v1  ;;  %v242_v17 = vxor.u32 %v541_v7, %v230_v3 }
  0x62   : > { %v243_v20 = vmul.u32 3266489909, %v239_v8  ;;  %v244_v21 = vmul.u32 3266489909, %v240_v9  ;;  %v161_v8 = vld [vmem:[%s855_s6 + $0x18] sm:$0xff] }
  0x63   : > { %v245_v24 = vmul.u32 3266489909, %v241_v16  ;;  %v246_v25 = vmul.u32 3266489909, %v242_v17 }
  0x64   : > { %v542_v28 = vshrl.u32 %v243_v20, 16  ;;  %v543_v29 = vshrl.u32 %v244_v21, 16 }
  0x65   : > { %v544_v30 = vshrl.u32 %v245_v24, 16  ;;  %v545_v31 = vshrl.u32 %v246_v25, 16 }
  0x66   : > { %v255_v32 = vxor.u32 %v542_v28, %v243_v20  ;;  %v256_v33 = vxor.u32 %v543_v29, %v244_v21 }
  0x67   : > { %v257_v36 = vxor.u32 %v544_v30, %v245_v24  ;;  %v258_v37 = vxor.u32 %v545_v31, %v246_v25 }
  0x68   : > { %v275_v40 = vand.u32 65535, %v255_v32  ;;  %v276_v41 = vand.u32 65535, %v256_v33  ;;  %v550_v42 = vshrl.u32 %v255_v32, 16  ;;  %v551_v43 = vshrl.u32 %v256_v33, 16 }
  0x69   : > { %v277_v44 = vand.u32 65535, %v257_v36  ;;  %v278_v45 = vand.u32 65535, %v258_v37  ;;  %v552_v46 = vshrl.u32 %v257_v36, 16  ;;  %v553_v47 = vshrl.u32 %v258_v37, 16 }
  0x6a   : > { %v279_v48 = vadd.s32 %v275_v40, %v271_v34  ;;  %v280_v49 = vadd.s32 %v276_v41, %v272_v35  ;;  %v723_v34 = vmov 0  }
  0x6b   : > { %v281_v50 = vadd.s32 %v277_v44, %v273_v38  ;;  %v282_v51 = vadd.s32 %v278_v45, %v274_v39  ;;  %619 = vset.pattern.permute.xlu1 %v723_v34  ;;  %620 = vset.pattern.permute.xlu0 %v723_v34 }
  0x6c   : > { %v291_v52 = vadd.s32 %v550_v42, %v279_v48  ;;  %v292_v53 = vadd.s32 %v551_v43, %v280_v49 }
  0x6d   : > { %v293_v54 = vadd.s32 %v552_v46, %v281_v50  ;;  %v294_v55 = vadd.s32 %v553_v47, %v282_v51 }
  0x6e   : > { %v295_v56 = vcvt.s32.f32 %v291_v52  ;;  %v296_v57 = vcvt.s32.f32 %v292_v53 }
  0x6f   : > { %v297_v58 = vcvt.s32.f32 %v293_v54  ;;  %v298_v59 = vcvt.s32.f32 %v294_v55 }
  0x70   : > { %v554_v62 = vadd.f32 -131070.0, %v295_v56  ;;  %v555_v63 = vadd.f32 -131070.0, %v296_v57 }
  0x71   : > { %v556_v0 = vadd.f32 -131070.0, %v297_v58  ;;  %v557_v1 = vadd.f32 -131070.0, %v298_v59 }
  0x72   : > { %v303_v3 = vmul.f32 2.6428997e-05, %v554_v62  ;;  %v304_v4 = vmul.f32 2.6428997e-05, %v555_v63 }
  0x73   : > { %v305_v6 = vmul.f32 2.6428997e-05, %v556_v0  ;;  %v306_v7 = vmul.f32 2.6428997e-05, %v557_v1 }
  0x74   : > { %v311_v9 = vsel %vm307_vm0, %v303_v3, 0.0  ;;  %v312_v14 = vsel %vm308_vm1, %v304_v4, 0.0 }
  0x75   : > { %v313_v15 = vsel %vm309_vm2, %v305_v6, 0.0  ;;  %v314_v16 = vsel %vm310_vm3, %v306_v7, 0.0  ;;  %v888_v17 = vadd.f32 %v311_v9, %v158_v60  ;;  %v890_v18 = vadd.f32 %v312_v14, %v159_v61 }
  0x76   : > { %v892_v10 = vadd.f32 %v313_v15, %v160_v5  ;;  %v894_v11 = vadd.f32 %v314_v16, %v161_v8 }
  0x77   : > { %v323_v12 = vadd.f32 %v890_v18, %v888_v17  ;;  %v372_v13 = vrot.slane %v888_v17, 7  ;;  %v373_v19 = vrot.slane %v890_v18, 7 }
  0x78   : > { %v375_v20 = vrot.slane %v892_v10, 7  ;;  %v377_v25 = vrot.slane %v894_v11, 7 }
  0x79   : > { %v324_v21 = vadd.f32 %v323_v12, %v892_v10  ;;  %v374_v22 = vsel %vm333_vm4, %v372_v13, %v373_v19 }
  0x7a   : > { %381 = vrot.lane.b32.xlu1 %v374_v22, %s722_s7  ;;  %v376_v24 = vsel %vm333_vm4, %v373_v19, %v375_v20  ;;  %v378_v28 = vsel %vm333_vm4, %v375_v20, %v377_v25 }
  0x7b   : > { %v325_v23 = vadd.f32 %v324_v21, %v894_v11 }
  0x7d   : > { %v326_v26 = vrot.slane %v325_v23, 4 }
  0x7e   : > { %383 = vrot.lane.b32.xlu1 %v376_v24, %s722_s7 }
  0x7f   : > { %v327_v27 = vadd.f32 %v326_v26, %v325_v23 }
  0x81   : > { %v328_v29 = vrot.slane %v327_v27, 2 }
  0x82   : > { %385 = vrot.lane.b32.xlu1 %v378_v28, %s722_s7 }
  0x83   : > { %v329_v30 = vadd.f32 %v328_v29, %v327_v27 }
  0x85   : > { %v330_v31 = vrot.slane %v329_v30, 1 }
  0x87   : > { %v331_v32 = vadd.f32 %v330_v31, %v329_v30 }
  0x89   : > { %v334_v33 = vsel %vm333_vm4, %v331_v32, 0.0 }
  0x8a   : > { %335 = vadd.xlane.f32.xlu0 %v334_v33 }
  0xa0   : > { %379 = vrot.lane.b32.xlu0 %v372_v13, %s722_s7 }
  0xa4   : > { %355 = vrot.lane.b32.xlu0 %v888_v17, %s722_s7 }
  0xa8   : > { %359 = vrot.lane.b32.xlu0 %v892_v10, %s722_s7 }
  0xec   : > { %v382_v38 = vpop.permute.xlu1 %381 }
  0xf0   : > { %v384_v44 = vpop.permute.xlu1 %383 }
  0xf4   : > { %v386_v46 = vpop.permute.xlu1 %385 }
 0x117   : > { %v336_v35 = vpop.xlane.xlu0 %335 }
 0x118   : > { %v337_v36 = vrot.slane %v336_v35, 4 }
 0x11a   : > { %v338_v37 = vadd.f32 %v337_v36, %v336_v35 }
 0x11b   : > { %v380_v39 = vpop.permute.xlu0 %379 }
 0x11c   : > { %v339_v40 = vrot.slane %v338_v37, 2  ;;  %v388_v41 = vsel %vm333_vm4, %v888_v17, %v380_v39 }
 0x11d   : > { %391 = vperm.xlu1 %619, %v388_v41  }
 0x11e   : > { %v340_v42 = vadd.f32 %v339_v40, %v338_v37 }
 0x11f   : > { %v356_v47 = vpop.permute.xlu0 %355 }
 0x120   : > { %v341_v43 = vrot.slane %v340_v42, 1  ;;  %v368_v49 = vsel %vm367_vm5, %v888_v17, %v356_v47 }
 0x121   : > { %395 = vperm.xlu1 %619, %v382_v38  }
 0x122   : > { %v342_v45 = vadd.f32 %v341_v43, %v340_v42 }
 0x123   : > { %v360_v54 = vpop.permute.xlu0 %359 }
 0x124   : > { %565 = vpush %v342_v45  ;;  %v370_v59 = vsel %vm367_vm5, %v892_v10, %v360_v54 }
 0x125   : > { %399 = vperm.xlu1 %619, %v384_v44  }
 0x129   : > { %403 = vperm.xlu1 %619, %v386_v46  }
 0x12d   : > { %357 = vrot.lane.b32.xlu1 %v890_v18, %s722_s7 }
 0x131   : > { %361 = vrot.lane.b32.xlu1 %v894_v11, %s722_s7 }
 0x155   : > { %s566_s8 = spop %565 }
 0x156   : > { %v344_v48 = vstv %s566_s8 }
 0x157   : > { %v345_v50 = vmul.f32 0.00083333335, %v344_v48 }
 0x159   : > { %v346_v55 = vmul.f32 0.03, %v345_v50 }
 0x19c   : > { %v392_v51 = vpop.permute.xlu1 %391 }
 0x19d   : > { %v406_v52 = vsel %vm152_vm6, %v392_v51, %v368_v49 }
 0x19e   : > { %v410_v53 = vmul.f32 0.97, %v406_v52 }
 0x1a0   : > { %v414_v56 = vsub.f32 %v888_v17, %v410_v53  ;;  %v396_v57 = vpop.permute.xlu1 %395 }
 0x1a2   : > { %v418_v58 = vsub.f32 %v414_v56, %v346_v55 }
 0x1a4   : > { %422 = vst [vmem:[%s136_s9] sm:$0xff] %v418_v58  ;;  %v400_v60 = vpop.permute.xlu1 %399 }
 0x1a5   : > { %v408_v61 = vsel %vm152_vm6, %v400_v60, %v370_v59 }
 0x1a6   : > { %v412_v62 = vmul.f32 0.97, %v408_v61 }
 0x1a8   : > { %v416_v63 = vsub.f32 %v892_v10, %v412_v62  ;;  %v404_v0 = vpop.permute.xlu1 %403 }
 0x1aa   : > { %v420_v1 = vsub.f32 %v416_v63, %v346_v55 }
 0x1ac   : > { %424 = vst [vmem:[%s136_s9 + $0x10] sm:$0xff] %v420_v1  ;;  %v358_v3 = vpop.permute.xlu1 %357 }
 0x1ad   : > { %v369_v4 = vsel %vm367_vm5, %v890_v18, %v358_v3 }
 0x1ae   : > { %v407_v5 = vsel %vm152_vm6, %v396_v57, %v369_v4 }
 0x1af   : > { %v411_v6 = vmul.f32 0.97, %v407_v5 }
 0x1b0   : > { %v362_v7 = vpop.permute.xlu1 %361 }
 0x1b1   : > { %v415_v8 = vsub.f32 %v890_v18, %v411_v6  ;;  %v371_v9 = vsel %vm367_vm5, %v894_v11, %v362_v7 }
 0x1b2   : > { %v409_v14 = vsel %vm152_vm6, %v404_v0, %v371_v9 }
 0x1b3   : > { %v419_v15 = vsub.f32 %v415_v8, %v346_v55  ;;  %v413_v16 = vmul.f32 0.97, %v409_v14 }
 0x1b5   : > { %423 = vst [vmem:[%s136_s9 + $0x8] sm:$0xff] %v419_v15  ;;  %v417_v17 = vsub.f32 %v894_v11, %v413_v16 }
 0x1b7   : > { %v421_v18 = vsub.f32 %v417_v17, %v346_v55 }
 0x1b9   : > { %425 = vst [vmem:[%s136_s9 + $0x18] sm:$0xff] %v421_v18 }
 0x1ba   : > { %664 = shalt.err (!%p661_p2)
}
 0x1bb   : > { %s665_s30 = scalar_lea.hbm %s949_s20, 512  ;;  %s669_s3 = scalar_lea.hbm %s997_s2, 1024 }
 0x1bc   : > { %p666_p4 = scmp.ne.s32.totalorder %s949_s20, %s665_s30  ;;  %p670_p9 = scmp.lt.u32.totalorder %s949_s20, %s997_s2 }
 0x1bd   : > { %p671_p1 = scmp.lt.u32.totalorder %s669_s3, %s665_s30  ;;  %p673_p6 = scmp.lt.u32.totalorder %s665_s30, %s949_s20 }
 0x1be   : > { %p667_p5 = pnand %p666_p4, %p1004_p11 }
 0x1bf   : > { %p672_p3 = por %p671_p1, %p670_p9 }
 0x1c0   : > { %p668_p7 = pneg %p667_p5 }
 0x1c1   : > { %p674_p12 = por %p673_p6, %p672_p3 }
 0x1c3   : > { %p675_p13 = pnand %p674_p12, %p668_p7 }
 0x1c5   : > { %678 = shalt.err (!%p675_p13)
}
 0x1c6   : > { %s725_s5 = smov 128   ;;  %s726_s7 = smov 8  }
 0x1c7   : > { %569 = dma.vmem_to_hbm [thread:$0]  (%p1004_p11), %s951_s15, 512, %s949_s20, %s427_s24, %s725_s5, %s725_s5, %s726_s7  }
 0x1c8 PF: > { %s455_s8 = sand.u32 1, %s705_s11   ;;  %p1005_p8 = scmp.ne.s32.totalorder %s1002_s23, 0 }
 0x1c9   : > { %p1006_p10 = scmp.ge.s32.totalorder %s717_s14, 2  ;;  %s456_s9 = scalar_lea.sflag [#allocation6], %s455_s8 }
 0x1cb   : > { %p576_p0 = pnand %p1006_p10, %p1005_p8 }
 0x1cd   : > { %700 = dma.done.wait (!%p576_p0), %s456_s9, 512  }
 0x1ce   : > { %702 = vsyncadd (!%p576_p0), %s456_s9, 4294966784  ;;  %p16_p2 = scmp.ge.s32.totalorder %s770_s16, 4   ;;  %s1007_s11 = smov %s709_s12 }
 0x1cf   : > { %s1008_s12 = smov %s713_s13  ;;  %s1009_s13 = smov %s782_s19 }
 0x1d0   : > { %s1010_s14 = smov %s770_s16  ;;  %18 = sbr.rel (!%p16_p2) target bundleno = 7 (0x7), region = 69 }
 0x1d7   :  { %461 = vsyncpa [#allocation5], 1 }
 0x1d8   :  { %463 = vsyncpa [#allocation5 + $0x1], 1 }
 0x1d9   :  { %464 = vsyncpa [#allocation6], 1 }
 0x1da   :  { %466 = vsyncpa [#allocation6 + $0x1], 1 }

</bundles_post_ra>
